<compile_context>
chip_gen: v7x
topology: tpu7x:2x2x1
jax: 0.10.0
libtpu: 0.0.40
codegen_flags: <defaults>
</compile_context>

<pallas_src>
import functools
import math

import jax
import jax.numpy as jnp
from jax.experimental import pallas as pl
from jax.experimental.pallas import tpu as pltpu

LAMDA = 0.2
LANE = 128


def _center_loss_kernel(x_ref, fused_ref, ct_ref, label_ref, out_ref, loss_ref,
                        *, n_classes):
    x = x_ref[...]           # (B, D)      f32
    fused = fused_ref[...]   # (D, 2*CP)   bf16  [W_pad | center^T_pad]
    ct = ct_ref[...]         # (D, CP)     f32   zero-padded center^T
    labels = label_ref[...]  # (B, 1)      int32

    B, D = x.shape
    CP = ct.shape[1]

    # ---- single fused MXU contraction over D (bf16 in, f32 accumulate) ----
    prod = jnp.dot(x.astype(jnp.bfloat16), fused,
                   preferred_element_type=jnp.float32)          # (B, 2*CP)
    logits = prod[:, :CP]                                        # x @ W   (padded)
    x_dot_c = prod[:, CP:]                                       # x @ C^T (padded)

    # lane-aligned one-hot / validity masks over the padded class dim
    class_ids = jax.lax.broadcasted_iota(jnp.int32, (B, CP), 1)
    onehot = (class_ids == labels).astype(jnp.float32)           # (B, CP)
    valid = class_ids < n_classes                                # (B, CP)

    # ---- center loss: ||x - c_y||_F via ||x||^2 - 2 x.c_y + ||c_y||^2 ----
    xnorm2 = jnp.sum(x * x, axis=-1, keepdims=True)              # (B, 1)
    cnorm2 = jnp.sum(ct * ct, axis=0, keepdims=True)             # (1, CP) XLU reduce
    xc_y = jnp.sum(x_dot_c * onehot, axis=-1, keepdims=True)     # (B, 1)
    cy2 = jnp.sum(cnorm2 * onehot, axis=-1, keepdims=True)       # (B, 1)
    d2 = jnp.maximum(xnorm2 - 2.0 * xc_y + cy2, 0.0)             # clamp cancellation
    dist = jnp.sqrt(jnp.sum(d2))
    centerloss = (0.5 / B) * dist

    # ---- lane-dense logits writeback (padded; wrapper slices to C) ----
    out_ref[...] = logits

    # ---- mean cross-entropy over valid classes (stable log-sum-exp) ----
    masked = jnp.where(valid, logits, -1e30)
    m = jnp.max(masked, axis=-1, keepdims=True)                  # (B, 1)
    lse = m + jnp.log(jnp.sum(jnp.exp(masked - m), axis=-1, keepdims=True))
    true_logit = jnp.sum(logits * onehot, axis=-1, keepdims=True)
    ce = jnp.mean(lse - true_logit)

    # scalar loss straight to SMEM
    loss_ref[0, 0] = ce + LAMDA * centerloss


def center_loss_forward(x, label, center, weight):
    """Returns (out, loss) matching CenterLoss.forward."""
    B, D = x.shape
    C = weight.shape[1]
    CP = ((C + LANE - 1) // LANE) * LANE  # lane-dense padded class dim

    # Parameter packing (XLA glue): f32 padded center^T for exact row norms,
    # and the single bf16 contraction matrix [W_pad | center^T_pad].
    ct_pad = jnp.zeros((D, CP), jnp.float32).at[:, :C].set(center.T)
    w_pad = jnp.zeros((D, CP), jnp.float32).at[:, :C].set(weight)
    fused = jnp.concatenate([w_pad, ct_pad], axis=1).astype(jnp.bfloat16)

    label2d = label.reshape(B, 1).astype(jnp.int32)

    cost = pl.CostEstimate(
        flops=2 * B * D * (2 * CP) + 8 * B * CP,
        transcendentals=B * CP + B + 1,           # exp, log, sqrt
        bytes_accessed=(B * D + D * CP + B * CP + 1) * 4 + D * 2 * CP * 2 + B * 4,
    )

    kernel = functools.partial(_center_loss_kernel, n_classes=C)

    out_pad, loss = pl.pallas_call(
        kernel,
        out_shape=(
            jax.ShapeDtypeStruct((B, CP), jnp.float32),   # lane-dense logits
            jax.ShapeDtypeStruct((1, 1), jnp.float32),    # scalar loss (SMEM)
        ),
        in_specs=[
            pl.BlockSpec(memory_space=pltpu.MemorySpace.VMEM),  # x (f32)
            pl.BlockSpec(memory_space=pltpu.MemorySpace.VMEM),  # fused (bf16)
            pl.BlockSpec(memory_space=pltpu.MemorySpace.VMEM),  # center^T (f32)
            pl.BlockSpec(memory_space=pltpu.MemorySpace.VMEM),  # labels (i32)
        ],
        out_specs=(
            pl.BlockSpec(memory_space=pltpu.MemorySpace.VMEM),
            pl.BlockSpec(memory_space=pltpu.MemorySpace.SMEM),
        ),
        cost_estimate=cost,
    )(x.astype(jnp.float32), fused, ct_pad, label2d)

    return out_pad[:, :C], loss[0, 0]


def _reference(x, label, center, weight):
    n_center = jnp.take(center, label, axis=0)
    dist = jnp.sqrt(jnp.sum((x - n_center) ** 2))
    centerloss = 0.5 / x.shape[0] * dist
    out = x @ weight
    logz = jax.nn.logsumexp(out, axis=-1)
    ce = jnp.mean(logz - jnp.take_along_axis(out, label[:, None], axis=-1)[:, 0])
    return out, ce + LAMDA * centerloss


if __name__ == "__main__":
    batch, n_output, n_classes = 8, 32, 16

    key = jax.random.PRNGKey(0)
    k_x, k_lab, k_center, k_w = jax.random.split(key, 4)

    # Parameters (deterministic init, matching the PyTorch module's __init__)
    center = 10.0 * jax.random.normal(k_center, (n_classes, n_output), jnp.float32)
    # xavier_uniform_ for a (n_output, n_classes) matrix
    bound = math.sqrt(6.0 / (n_output + n_classes))
    weight = jax.random.uniform(
        k_w, (n_output, n_classes), jnp.float32, minval=-bound, maxval=bound
    )

    # Inputs
    x = jax.random.normal(k_x, (batch, n_output), jnp.float32)
    label = jax.random.randint(k_lab, (batch,), 0, n_classes, jnp.int32)

    out, loss = center_loss_forward(x, label, center, weight)
    out = jax.block_until_ready(out)
    loss = jax.block_until_ready(loss)

    out_ref, loss_ref = _reference(x, label, center, weight)
    # Tolerances account for bf16 MXU operands (f32 accumulation).
    assert jnp.allclose(out, out_ref, atol=5e-2, rtol=2e-2), (out, out_ref)
    assert jnp.allclose(loss, loss_ref, atol=5e-2, rtol=1e-2), (loss, loss_ref)

    print("KERNEL_OK")
</pallas_src>

<mosaic_0001>
module attributes {stable_mosaic.version = 11 : i64} {
  func.func @_center_loss_kernel(%arg0: memref<8x32xf32, #tpu.memory_space<vmem>>, %arg1: memref<32x256xbf16, #tpu.memory_space<vmem>>, %arg2: memref<32x128xf32, #tpu.memory_space<vmem>>, %arg3: memref<8x1xi32, #tpu.memory_space<vmem>>, %arg4: memref<8x128xf32, #tpu.memory_space<vmem>>, %arg5: memref<1x1xf32, #tpu.memory_space<smem>>) attributes {dimension_semantics = [], scalar_prefetch = 0 : i64, scratch_operands = 0 : i64, tpu.core_type = #tpu.core_type<tc>} {
    %c0 = arith.constant 0 : index
    %c0_0 = arith.constant 0 : index
    %0 = vector.load %arg0[%c0, %c0_0] : memref<8x32xf32, #tpu.memory_space<vmem>>, vector<8x32xf32>
    %c0_1 = arith.constant 0 : index
    %c0_2 = arith.constant 0 : index
    %1 = vector.load %arg1[%c0_1, %c0_2] : memref<32x256xbf16, #tpu.memory_space<vmem>>, vector<32x256xbf16>
    %c0_3 = arith.constant 0 : index
    %c0_4 = arith.constant 0 : index
    %2 = vector.load %arg2[%c0_3, %c0_4] : memref<32x128xf32, #tpu.memory_space<vmem>>, vector<32x128xf32>
    %c0_5 = arith.constant 0 : index
    %c0_6 = arith.constant 0 : index
    %3 = vector.load %arg3[%c0_5, %c0_6] : memref<8x1xi32, #tpu.memory_space<vmem>>, vector<8x1xi32>
    %4 = arith.truncf %0 : vector<8x32xf32> to vector<8x32xbf16>
    %cst = arith.constant dense<0.000000e+00> : vector<8x256xf32>
    %5 = tpu.matmul %4, %1, %cst {dimension_numbers = #tpu.dot_dimension_numbers<[1], [0], [0], [1], [0, 0, 1, 1], [], []>} : vector<8x32xbf16>, vector<32x256xbf16>, vector<8x256xf32> -> vector<8x256xf32>
    %6 = vector.extract_strided_slice %5 {offsets = [0, 0], sizes = [8, 128], strides = [1, 1]} : vector<8x256xf32> to vector<8x128xf32>
    %7 = vector.extract_strided_slice %5 {offsets = [0, 128], sizes = [8, 128], strides = [1, 1]} : vector<8x256xf32> to vector<8x128xf32>
    %8 = tpu.iota {dimensions = array<i32: 1>} : vector<8x128xi32>
    %9 = vector.broadcast %3 : vector<8x1xi32> to vector<8x128xi32>
    %10 = arith.cmpi eq, %8, %9 : vector<8x128xi32>
    %11 = arith.extui %10 : vector<8x128xi1> to vector<8x128xi32>
    %12 = arith.sitofp %11 : vector<8x128xi32> to vector<8x128xf32>
    %c16_i32 = arith.constant 16 : i32
    %13 = vector.broadcast %c16_i32 : i32 to vector<8x128xi32>
    %14 = arith.cmpi slt, %8, %13 : vector<8x128xi32>
    %15 = arith.mulf %0, %0 : vector<8x32xf32>
    %cst_7 = arith.constant dense<0.000000e+00> : vector<8xf32>
    %16 = vector.multi_reduction <add>, %15, %cst_7 [1] : vector<8x32xf32> to vector<8xf32>
    %17 = vector.shape_cast %16 : vector<8xf32> to vector<8x1xf32>
    %18 = arith.mulf %2, %2 : vector<32x128xf32>
    %cst_8 = arith.constant dense<0.000000e+00> : vector<128xf32>
    %19 = vector.multi_reduction <add>, %18, %cst_8 [0] : vector<32x128xf32> to vector<128xf32>
    %20 = vector.shape_cast %19 : vector<128xf32> to vector<1x128xf32>
    %21 = arith.mulf %7, %12 : vector<8x128xf32>
    %cst_9 = arith.constant dense<0.000000e+00> : vector<8xf32>
    %22 = vector.multi_reduction <add>, %21, %cst_9 [1] : vector<8x128xf32> to vector<8xf32>
    %23 = vector.shape_cast %22 : vector<8xf32> to vector<8x1xf32>
    %24 = vector.broadcast %20 : vector<1x128xf32> to vector<8x128xf32>
    %25 = arith.mulf %24, %12 : vector<8x128xf32>
    %cst_10 = arith.constant dense<0.000000e+00> : vector<8xf32>
    %26 = vector.multi_reduction <add>, %25, %cst_10 [1] : vector<8x128xf32> to vector<8xf32>
    %27 = vector.shape_cast %26 : vector<8xf32> to vector<8x1xf32>
    %cst_11 = arith.constant 2.000000e+00 : f32
    %28 = vector.broadcast %cst_11 : f32 to vector<8x1xf32>
    %29 = arith.mulf %28, %23 : vector<8x1xf32>
    %30 = arith.subf %17, %29 : vector<8x1xf32>
    %31 = arith.addf %30, %27 : vector<8x1xf32>
    %cst_12 = arith.constant 0.000000e+00 : f32
    %32 = vector.broadcast %cst_12 : f32 to vector<8x1xf32>
    %33 = arith.maximumf %31, %32 : vector<8x1xf32>
    %34 = vector.shape_cast %33 : vector<8x1xf32> to vector<1x8x1xf32>
    %cst_13 = arith.constant dense<0.000000e+00> : vector<1xf32>
    %35 = vector.multi_reduction <add>, %34, %cst_13 [1, 2] : vector<1x8x1xf32> to vector<1xf32>
    %36 = vector.shape_cast %35 : vector<1xf32> to vector<1x1x1xf32>
    %37 = vector.extract %36[0, 0, 0] : f32 from vector<1x1x1xf32>
    %38 = math.sqrt %37 : f32
    %cst_14 = arith.constant 6.250000e-02 : f32
    %39 = arith.mulf %cst_14, %38 : f32
    %c0_15 = arith.constant 0 : index
    %c0_16 = arith.constant 0 : index
    %40 = vector.load %arg4[%c0_15, %c0_16] : memref<8x128xf32, #tpu.memory_space<vmem>>, vector<8x128xf32>
    tpu.vector_store %arg4[%c0_15, %c0_16], %6 {strides = array<i32>} : memref<8x128xf32, #tpu.memory_space<vmem>>, vector<8x128xf32>,
    %cst_17 = arith.constant -1.000000e+30 : f32
    %41 = vector.broadcast %cst_17 : f32 to vector<8x128xf32>
    %42 = arith.select %14, %6, %41 : vector<8x128xi1>, vector<8x128xf32>
    %cst_18 = arith.constant dense<0xFF800000> : vector<8xf32>
    %43 = vector.multi_reduction <maximumf>, %42, %cst_18 [1] : vector<8x128xf32> to vector<8xf32>
    %44 = vector.shape_cast %43 : vector<8xf32> to vector<8x1xf32>
    %45 = vector.broadcast %44 : vector<8x1xf32> to vector<8x128xf32>
    %46 = arith.subf %42, %45 : vector<8x128xf32>
    %47 = math.exp %46 : vector<8x128xf32>
    %cst_19 = arith.constant dense<0.000000e+00> : vector<8xf32>
    %48 = vector.multi_reduction <add>, %47, %cst_19 [1] : vector<8x128xf32> to vector<8xf32>
    %49 = vector.shape_cast %48 : vector<8xf32> to vector<8x1xf32>
    %50 = math.log %49 : vector<8x1xf32>
    %51 = arith.addf %44, %50 : vector<8x1xf32>
    %52 = arith.mulf %6, %12 : vector<8x128xf32>
    %cst_20 = arith.constant dense<0.000000e+00> : vector<8xf32>
    %53 = vector.multi_reduction <add>, %52, %cst_20 [1] : vector<8x128xf32> to vector<8xf32>
    %54 = vector.shape_cast %53 : vector<8xf32> to vector<8x1xf32>
    %55 = arith.subf %51, %54 : vector<8x1xf32>
    %56 = vector.shape_cast %55 : vector<8x1xf32> to vector<1x8x1xf32>
    %cst_21 = arith.constant dense<0.000000e+00> : vector<1xf32>
    %57 = vector.multi_reduction <add>, %56, %cst_21 [1, 2] : vector<1x8x1xf32> to vector<1xf32>
    %58 = vector.shape_cast %57 : vector<1xf32> to vector<1x1x1xf32>
    %59 = vector.extract %58[0, 0, 0] : f32 from vector<1x1x1xf32>
    %cst_22 = arith.constant 8.000000e+00 : f32
    %60 = arith.divf %59, %cst_22 : f32
    %cst_23 = arith.constant 2.000000e-01 : f32
    %61 = arith.mulf %cst_23, %39 : f32
    %62 = arith.addf %60, %61 : f32
    %c0_24 = arith.constant 0 : index
    %c0_25 = arith.constant 0 : index
    %63 = memref.load %arg5[%c0_24, %c0_25] : memref<1x1xf32, #tpu.memory_space<smem>>
    memref.store %62, %arg5[%c0_24, %c0_25] : memref<1x1xf32, #tpu.memory_space<smem>>
    return
  }
}

</mosaic_0001>

<bundles_post_ra>
// kernel: tpu_custom_call.1
= control target key start
LH: loop header
LB: loop body
LE: loop exit
PB: predicated region body
PF: predicated region fallthrough
CT: control target
= control target key end

     0   :  { %11 = vsyncpa [#allocation3], 0  ;;  %s456_s0 = inlined_call_operand.vmem [shape: f32[8,32], index: 0, kind: input, shape index: {}]   ;;  %s457_s1 = inlined_call_operand.hbm [shape: bf16[32,256], index: 1, kind: input, shape index: {}]   ;;  %s458_s2 = inlined_call_operand.hbm [shape: f32[32,128], index: 2, kind: input, shape index: {}]   ;;  %s459_s3 = inlined_call_operand.vmem [shape: s32[8,1], index: 3, kind: input, shape index: {}]   ;;  %s460_s4 = inlined_call_operand.hbm [shape: f32[8,128], index: 4, kind: output, shape index: {0}]   ;;  %s461_s5 = inlined_call_operand.hbm [shape: f32[1,1], index: 5, kind: output, shape index: {1}]  }
   0x1   :  { %12 = vsyncpa [#allocation7], 0 }
   0x2   :  { %13 = vsyncpa [#allocation4], 0 }
   0x3   :  { %14 = vsyncpa [#allocation5], 0  ;;  %s362_s18 = smov [#allocation2]   ;;  %s278_s22 = scalar_lea.hbm %s457_s1, 512 }
   0x4   :  { %s22_s19 = sshll.u32 %s362_s18, 4  ;;  %p279_p0 = scmp.ne.s32.totalorder %s457_s1, %s278_s22  ;;  %s23_s19 = int_to_ptr.vmem [resolvable:$true] %s22_s19 }
   0x5   :  { %p282_p1 = scmp.lt.u32.totalorder %s278_s22, %s457_s1 }
   0x7   :  { %p284_p2 = pnand %p282_p1, %p279_p0 }
   0x9   :  { %287 = shalt.err (!%p284_p2)
}
   0xa   :  { %s288_s27 = scalar_lea.vmem %s23_s19, 512  ;;  %p293_p4 = scmp.lt.s32.totalorder %s23_s19, %s23_s19 }
   0xb   :  { %p289_p3 = scmp.ne.s32.totalorder %s23_s19, %s288_s27  ;;  %p294_p5 = scmp.lt.s32.totalorder %s288_s27, %s288_s27 }
   0xd   :  { %p295_p6 = por %p294_p5, %p293_p4 }
   0xf   :  { %p296_p7 = pnand %p295_p6, %p289_p3 }
  0x11   :  { %299 = shalt.err (!%p296_p7)
}
  0x12   :  { %s363_s28 = smov 128   ;;  %s364_s29 = smov 8  }
  0x13   :  { %28 = dma.hbm_to_vmem [thread:$0]  %s457_s1, 512, %s23_s19, [#allocation3], %s363_s28, %s363_s28, %s364_s29  }
  0x14   :  { %s365_s7 = smov [#allocation6]   ;;  %s300_s11 = scalar_lea.hbm %s458_s2, 512 }
  0x15   :  { %s34_s8 = sshll.u32 %s365_s7, 4  ;;  %p301_p8 = scmp.ne.s32.totalorder %s458_s2, %s300_s11  ;;  %s35_s8 = int_to_ptr.vmem [resolvable:$true] %s34_s8 }
  0x16   :  { %p304_p9 = scmp.lt.u32.totalorder %s300_s11, %s458_s2 }
  0x18   :  { %p306_p10 = pnand %p304_p9, %p301_p8 }
  0x1a   :  { %309 = shalt.err (!%p306_p10)
}
  0x1b   :  { %s310_s16 = scalar_lea.vmem %s35_s8, 512  ;;  %p315_p12 = scmp.lt.s32.totalorder %s35_s8, %s35_s8 }
  0x1c   :  { %p311_p11 = scmp.ne.s32.totalorder %s35_s8, %s310_s16  ;;  %p316_p13 = scmp.lt.s32.totalorder %s310_s16, %s310_s16 }
  0x1e   :  { %p317_p0 = por %p316_p13, %p315_p12 }
  0x20   :  { %p318_p1 = pnand %p317_p0, %p311_p11 }
  0x22   :  { %321 = shalt.err (!%p318_p1)
}
  0x23   :  { %40 = dma.hbm_to_vmem [thread:$0]  %s458_s2, 512, %s35_s8, [#allocation7], %s363_s28, %s363_s28, %s364_s29  }
  0x24   :  { %354 = dma.done.wait [#allocation3], 512  }
  0x25   :  { %355 = vsyncadd [#allocation3], 4294966784 }
  0x26   :  { %356 = dma.done.wait [#allocation7], 512  }
  0x27   :  { %357 = vsyncadd [#allocation7], 4294966784  ;;  %v366_v0 = vmov 0   ;;  %v266_v1 = vld [vmem:[#allocation2 + $0x4] ss:$8 sps:$4 sm:$0xff]   ;;  %vm81_vm0 = vcmask 261120   ;;  %v126_v23 = vlaneseq }
  0x28   :  { %117 = vmatprep.mubr.bf16.mxu0 %v366_v0  ;;  %265 = vset.pattern.permute.xlu0 %v366_v0  ;;  %v268_v2 = vld [vmem:[#allocation2] ss:$8 sps:$4 sm:$0xff]   ;;  %v269_v3 = vld [vmem:[#allocation2 + $0x14] ss:$8 sps:$4 sm:$0xff]   ;;  %v271_v4 = vld [vmem:[#allocation2 + $0x10] ss:$8 sps:$4 sm:$0xff]  }
  0x29   :  { %85 = vmatprep.subr.bf16.mxu0 %v266_v1  ;;  %v50_v5 = vld [vmem:[%s456_s0] sm:$0xff]  ;;  %v56_v11 = vld [vmem:[#allocation6 + $0x8] sm:$0xff]  ;;  %v57_v14 = vld [vmem:[#allocation6 + $0x10] sm:$0xff]  ;;  %v127_v25 = vand.u32 127, %v126_v23  ;;  %v367_v29 = vmov 0.0   ;;  %vm162_vm3 = vcmask 7168  }
  0x2a   :  { %86 = vmatpush1.bf16.msra.mxu0 %v268_v2  ;;  %v59_v6 = vld [vmem:[%s459_s3] sm:$0xff]  ;;  %v135_v7 = vmul.f32 %v50_v5, %v50_v5  ;;  %v60_v8 = vpack.c.bf16 %v50_v5, %v50_v5  ;;  %v140_v13 = vmul.f32 %v56_v11, %v56_v11  ;;  %v141_v15 = vmul.f32 %v57_v14, %v57_v14  ;;  %v58_v17 = vld [vmem:[#allocation6 + $0x18] sm:$0xff]  ;;  %s368_s2 = smov [#allocation8]  }
  0x2b   :  { %87 = vmatprep.subr.bf16.mxu0 %v269_v3  ;;  %129 = vperm.xlu0 %265, %v59_v6   ;;  %v55_v10 = vld [vmem:[#allocation6] sm:$0xff]  ;;  %v142_v18 = vmul.f32 %v58_v17, %v58_v17  ;;  %vm134_vm2 = vcmp.lt.s32.totalorder %v127_v25, 16  ;;  %s222_s3 = sshll.u32 %s368_s2, 4  ;;  %s223_s3 = int_to_ptr.vmem [resolvable:$true] %s222_s3 }
  0x2c   :  { %v136_v9 = vsel %vm81_vm0, %v135_v7, 0.0  ;;  %v139_v12 = vmul.f32 %v55_v10, %v55_v10  ;;  %s322_s22 = scalar_lea.vmem %s223_s3, 128  ;;  %p327_p3 = scmp.lt.s32.totalorder %s223_s3, %s223_s3 }
  0x2d   :  { %137 = vadd.xlane.f32.xlu1 %v136_v9  ;;  %p323_p2 = scmp.ne.s32.totalorder %s223_s3, %s322_s22  ;;  %p328_p4 = scmp.lt.s32.totalorder %s322_s22, %s322_s22 }
  0x2e   :  { %88 = vmatpush1.bf16.msra.mxu0 %v271_v4  ;;  %v143_v16 = vadd.f32 %v140_v13, %v139_v12 }
  0x2f   :  { %p329_p5 = por %p328_p4, %p327_p3 }
  0x30   :  { %v144_v19 = vadd.f32 %v143_v16, %v141_v15 }
  0x31   :  { %249 = vmatmul.mubr.msk.bf16.vlgmr.msra.gmra.mrb[0].mxu0 %vm81_vm0, %v60_v8  ;;  %p330_p6 = pnand %p329_p5, %p323_p2 }
  0x32   :  { %v145_v20 = vadd.f32 %v144_v19, %v142_v18 }
  0x34   :  { %v146_v21 = vrot.slane %v145_v20, 4 }
  0x36   :  { %v147_v22 = vadd.f32 %v146_v21, %v145_v20 }
  0x38   :  { %v148_v24 = vrot.slane %v147_v22, 2 }
  0x3a   :  { %v149_v26 = vadd.f32 %v148_v24, %v147_v22 }
  0x3c   :  { %v150_v28 = vrot.slane %v149_v26, 1 }
  0x3e   :  { %v151_v32 = vadd.f32 %v150_v28, %v149_v26 }
  0xaa   :  { %v130_v27 = vpop.permute.xlu0 %129 }
  0xab   :  { %vm131_vm1 = vcmp.eq.s32.totalorder %v127_v25, %v130_v27 }
  0xac   :  { %v250_v30 = vsel %vm131_vm1, 1.0, %v367_v29 }
  0xad   :  { %v155_v38 = vmul.f32 %v250_v30, %v151_v32 }
  0xba   :  { %v138_v39 = vpop.xlane.xlu1 %137 }
 0x104   :  { %v119_v31 = vpop.f32.mrb[0].mxu0 }
 0x105   :  { %183 = vst [vmem:[#allocation8] sm:$0xff] %v119_v31  ;;  %v121_v33 = vpop.f32.mrb[1].mxu0  ;;  %v184_v34 = vsel %vm134_vm2, %v119_v31, -1e+30  ;;  %v195_v49 = vmul.f32 %v250_v30, %v119_v31 }
 0x106   :  { %v152_v35 = vmul.f32 %v250_v30, %v121_v33  ;;  %185 = vmax.xlane.f32.xlu0 %v184_v34  ;;  %v123_v36 = vpop.f32.mrb[2].mxu0 }
 0x107   :  { %v124_v37 = vpop.f32.mrb[3].mxu0 }
 0x108   :  { %153 = vadd.xlane.f32.xlu1 %v152_v35 }
 0x10c   :  { %156 = vadd.xlane.f32.xlu1 %v155_v38 }
 0x193   :  { %v186_v40 = vpop.xlane.xlu0 %185 }
 0x194   :  { %v187_v41 = vsub.f32 %v184_v34, %v186_v40 }
 0x195   :  { %v154_v43 = vpop.xlane.xlu1 %153 }
 0x196   :  { %v188_v42 = vmul.f32 1.442695, %v187_v41  ;;  %v158_v44 = vmul.f32 2.0, %v154_v43 }
 0x198   :  { %272 = vpow2.f32 %v188_v42  ;;  %v159_v45 = vsub.f32 %v138_v39, %v158_v44 }
 0x199   :  { %v157_v46 = vpop.xlane.xlu1 %156 }
 0x19a   :  { %v160_v48 = vadd.f32 %v159_v45, %v157_v46 }
 0x19c   :  { %v161_v50 = vmax.f32 %v160_v48, 0.0 }
 0x19e   :  { %v163_v51 = vsel %vm162_vm3, %v161_v50, 0.0 }
 0x1a2   :  { %v273_v47 = vpop.eup %272 }
 0x1a3   :  { %190 = vadd.xlane.f32.xlu1 %v273_v47 }
 0x1a7   :  { %196 = vadd.xlane.f32.xlu1 %v195_v49 }
 0x1ab   :  { %164 = vadd.xlane.f32.xlu1 %v163_v51 }
 0x230   :  { %v191_v52 = vpop.xlane.xlu1 %190 }
 0x231   :  { %274 = vlog2.f32 %v191_v52 }
 0x234   :  { %v197_v53 = vpop.xlane.xlu1 %196 }
 0x238   :  { %v165_v54 = vpop.xlane.xlu1 %164 }
 0x239   :  { %v166_v55 = vrot.slane %v165_v54, 4 }
 0x23b   :  { %v275_v56 = vpop.eup %274  ;;  %v167_v57 = vadd.f32 %v166_v55, %v165_v54 }
 0x23c   :  { %v193_v58 = vmul.f32 0.6931472, %v275_v56 }
 0x23d   :  { %v168_v59 = vrot.slane %v167_v57, 2 }
 0x23e   :  { %v194_v60 = vadd.f32 %v193_v58, %v186_v40 }
 0x23f   :  { %v169_v61 = vadd.f32 %v168_v59, %v167_v57 }
 0x240   :  { %v198_v62 = vsub.f32 %v194_v60, %v197_v53 }
 0x241   :  { %v170_v63 = vrot.slane %v169_v61, 1 }
 0x242   :  { %v199_v0 = vsel %vm162_vm3, %v198_v62, 0.0 }
 0x243   :  { %200 = vadd.xlane.f32.xlu1 %v199_v0  ;;  %v171_v1 = vadd.f32 %v170_v63, %v169_v61 }
 0x245   :  { %251 = vpush %v171_v1 }
 0x276   :  { %s252_s0 = spop %251 }
 0x277   :  { %v173_v2 = vstv %s252_s0 }
 0x278   :  { %276 = vrsqrt.f32 %v173_v2  ;;  %vm176_vm4 = vcmp.eq.f32.partialorder %v173_v2, inf  ;;  %v179_v5 = vand.u32 2147483648, %v173_v2  ;;  %vm178_vm5 = vcmp.eq.f32.partialorder %v173_v2, 0.0 }
 0x282   :  { %v277_v3 = vpop.eup %276 }
 0x283   :  { %v175_v4 = vmul.f32 %v277_v3, %v173_v2 }
 0x285   :  { %v177_v6 = vsel %vm176_vm4, %v173_v2, %v175_v4 }
 0x286   :  { %v180_v7 = vsel %vm178_vm5, %v179_v5, %v177_v6 }
 0x287   :  { %253 = vpush %v180_v7 }
 0x288   :  { %333 = shalt.err (!%p330_p6)
}
 0x289   :  { %s334_s25 = scalar_lea.hbm %s460_s4, 128 }
 0x28a   :  { %p335_p7 = scmp.ne.s32.totalorder %s460_s4, %s334_s25  ;;  %p338_p8 = scmp.lt.u32.totalorder %s334_s25, %s460_s4 }
 0x28c   :  { %p340_p9 = pnand %p338_p8, %p335_p7 }
 0x28e   :  { %343 = shalt.err (!%p340_p9)
}
 0x28f   :  { %225 = dma.vmem_to_hbm [thread:$0]  %s223_s3, 128, %s460_s4, [#allocation4]  }
 0x290   :  { %s344_s15 = scalar_lea.hbm %s461_s5, 16 }
 0x291   :  { %p345_p10 = scmp.ne.s32.totalorder %s461_s5, %s344_s15  ;;  %p348_p11 = scmp.lt.u32.totalorder %s344_s15, %s461_s5 }
 0x293   :  { %p350_p12 = pnand %p348_p11, %p345_p10 }
 0x2b8   :  { %s254_s7 = spop %253 }
 0x2b9   :  { %s182_s8 = smul.f32 0.0625, %s254_s7 }
 0x2bb   :  { %s212_s9 = smul.f32 0.2, %s182_s8 }
 0x2d0   :  { %v201_v8 = vpop.xlane.xlu1 %200 }
 0x2d1   :  { %v202_v9 = vrot.slane %v201_v8, 4 }
 0x2d3   :  { %v203_v10 = vadd.f32 %v202_v9, %v201_v8 }
 0x2d5   :  { %v204_v11 = vrot.slane %v203_v10, 2 }
 0x2d7   :  { %v205_v12 = vadd.f32 %v204_v11, %v203_v10 }
 0x2d9   :  { %v206_v13 = vrot.slane %v205_v12, 1 }
 0x2db   :  { %v207_v14 = vadd.f32 %v206_v13, %v205_v12 }
 0x2dd   :  { %255 = vpush %v207_v14 }
 0x30e   :  { %s256_s10 = spop %255 }
 0x30f   :  { %s211_s11 = smul.f32 0.125, %s256_s10 }
 0x311   :  { %s213_s12 = sadd.f32 %s212_s9, %s211_s11 }
 0x313   :  { %215 = sst [smem:[#allocation9]] %s213_s12 }
 0x314   :  { %353 = shalt.err (!%p350_p12)
}
 0x315   :  { %s369_s18 = smov [#allocation9]  }
 0x316   :  { %233 = dma.smem_to_hbm %s369_s18, 16, %s461_s5, [#allocation5]  }
 0x317   :  { %358 = dma.done.wait [#allocation4], 128  }
 0x318   :  { %359 = vsyncadd [#allocation4], 4294967168 }
 0x319   :  { %360 = dma.done.wait [#allocation5], 16  }
 0x31a   :  { %361 = vsyncadd [#allocation5], 4294967280 }
 0x31b   :  { %240 = sfence }
 0x31c   :  { %241 = vsyncpa [#allocation3], 1 }
 0x31d   :  { %242 = vsyncpa [#allocation7], 1 }
 0x31e   :  { %243 = vsyncpa [#allocation4], 1 }
 0x31f   :  { %244 = vsyncpa [#allocation5], 1 }

</bundles_post_ra>
